<compile_context>
chip_gen: v7x
topology: tpu7x:2x2x1
jax: 0.10.0
libtpu: 0.0.40
codegen_flags: <defaults>
</compile_context>

<pallas_src>
import functools

import jax
import jax.numpy as jnp
from jax import lax
from jax.experimental import pallas as pl
from jax.experimental.pallas import tpu as pltpu


def _round_up(n, m):
    return ((n + m - 1) // m) * m


# ---------------------------------------------------------------------------
# Kernels
# ---------------------------------------------------------------------------

def _gdn_kernel_small(x_ref, gamma_ref, beta_ref, o_ref, *,
                      inverse: bool, channels: int, lane_chunk: int):
    """Small-channel path (C <= 8): VPU broadcast-FMA with lane chunking.

    x_ref/o_ref: (B_TILE, C, TILE_S) VMEM blocks, spatial in lanes.
    gamma_ref:   (C, C)  VMEM resident.
    beta_ref:    (C, 1)  VMEM resident.
    """
    b_tile, _, tile_s = x_ref.shape
    n_chunks = tile_s // lane_chunk

    # Hoisted once per grid step (chunk-invariant): gamma columns + beta.
    gamma = gamma_ref[...]                                   # (C, C)
    gcols = [gamma[:, j:j + 1] for j in range(channels)]     # (C, 1) each
    beta = beta_ref[...]                                     # (C, 1)

    def process(b, start):
        x = x_ref[b, :, pl.ds(start, lane_chunk)].astype(jnp.float32)  # (C, L)
        x2 = x * x
        acc = gcols[0] * x2[0:1, :]
        for j in range(1, channels):
            acc = acc + gcols[j] * x2[j:j + 1, :]
        norm = acc + beta                                     # (C, L)
        if inverse:
            out = x * jnp.sqrt(norm)
        else:
            out = x * lax.rsqrt(norm)                         # single EUP op
        o_ref[b, :, pl.ds(start, lane_chunk)] = out.astype(o_ref.dtype)

    for b in range(b_tile):                                   # short static loop
        if n_chunks == 1:
            process(b, 0)
        else:
            def body(c, carry):
                process(b, pl.multiple_of(c * lane_chunk, 128))
                return carry
            lax.fori_loop(0, n_chunks, body, 0,
                          unroll=min(int(n_chunks), 8))


def _gdn_kernel_mxu(x_ref, gamma_ref, beta_ref, o_ref, *,
                    inverse: bool, mxu_bf16: bool):
    """Large-channel path (C > 8): channel mix on the MXU."""
    b_tile = x_ref.shape[0]
    gamma = gamma_ref[...]                                    # (C, C)
    beta = beta_ref[...]                                      # (C, 1)
    if mxu_bf16:                                              # opt-in (v5e, big C)
        gamma = gamma.astype(jnp.bfloat16)
    for b in range(b_tile):                                   # short static loop
        x = x_ref[b].astype(jnp.float32)                      # (C, TILE_S)
        x2 = x * x
        rhs = x2.astype(jnp.bfloat16) if mxu_bf16 else x2
        norm = jnp.dot(gamma, rhs, preferred_element_type=jnp.float32) + beta
        if inverse:
            out = x * jnp.sqrt(norm)
        else:
            out = x * lax.rsqrt(norm)
        o_ref[b] = out.astype(o_ref.dtype)


# ---------------------------------------------------------------------------
# Wrapper
# ---------------------------------------------------------------------------

def gdn_forward(x, beta_param, gamma_param, *, inverse=False,
                beta_min=1e-6, reparam_offset=2.0 ** (-18), mxu_bf16=False):
    """GDN forward. x is NCHW (or NCDHW, folded like the PyTorch module)."""
    orig_shape = None
    if x.ndim == 5:                                  # PyTorch "unfold" path
        bs, ch, d, w, h = x.shape
        orig_shape = x.shape
        x = x.reshape(bs, ch, d * w, h)

    B, C, H, W = x.shape
    S = H * W

    # ---- parameter reparameterization (tiny; done once, outside the kernel) ----
    pedestal = jnp.float32(reparam_offset ** 2)
    beta_bound = jnp.float32((beta_min + reparam_offset ** 2) ** 0.5)
    gamma_bound = jnp.float32(reparam_offset)
    beta = (jnp.maximum(beta_param, beta_bound) ** 2 - pedestal).astype(jnp.float32)
    gamma = (jnp.maximum(gamma_param, gamma_bound) ** 2 - pedestal).astype(jnp.float32)
    beta_col = beta.reshape(C, 1)

    # ---- layout: keep NCHW, flatten spatial into lanes (no transpose, no pad) ----
    x_flat = x.reshape(B, C, S)

    # ---- tile sizing from a byte budget -------------------------------------
    C_pad = _round_up(C, 8)                      # sublane padding for VMEM cost
    S_128 = _round_up(S, 128)
    TARGET_BYTES = 4 << 20                       # in+out HBM traffic per grid step
    VMEM_DATA_CAP = 16 << 20                     # double-buffered in+out block bytes

    tile_s = _round_up(max(128, TARGET_BYTES // (8 * C)), 128)
    tile_s_cap = max(128, (VMEM_DATA_CAP // (16 * C_pad)) // 128 * 128)
    tile_s = min(tile_s, tile_s_cap, S_128)

    # When one spatial tile covers the whole image, block the batch dim too so
    # each grid step still moves a respectable amount of data.
    b_tile = 1
    if tile_s >= S_128 and B > 1:
        tile_s = S_128
        want_b = TARGET_BYTES // (8 * C * tile_s)
        cap_b = VMEM_DATA_CAP // (16 * C_pad * tile_s)
        b_tile = int(max(1, min(B, want_b, cap_b, 8)))   # short static inner loop
        if b_tile >= B:
            b_tile = max(1, B // 2)              # keep >= 2 grid steps (megacore)

    grid = (pl.cdiv(B, b_tile), pl.cdiv(S, tile_s))   # ragged tails are clipped

    x_spec = pl.BlockSpec((b_tile, C, tile_s), lambda b, s: (b, 0, s))
    o_spec = pl.BlockSpec((b_tile, C, tile_s), lambda b, s: (b, 0, s))
    gamma_spec = pl.BlockSpec((C, C), lambda b, s: (0, 0))     # resident
    beta_spec = pl.BlockSpec((C, 1), lambda b, s: (0, 0))      # resident

    if C <= 8:
        lane_chunk = min(512, tile_s)
        while tile_s % lane_chunk:
            lane_chunk -= 128
        kernel = functools.partial(_gdn_kernel_small, inverse=inverse,
                                   channels=C, lane_chunk=lane_chunk)
        temp_blocks = 0                          # chunked path: no big temporaries
    else:
        kernel = functools.partial(_gdn_kernel_mxu, inverse=inverse,
                                   mxu_bf16=mxu_bf16)
        temp_blocks = 3                          # x2 / norm / out VMEM temporaries

    # Explicit scoped-VMEM budget (v5e default is only 16 MiB; v7x physical 64 MiB).
    blk_bytes = b_tile * C_pad * tile_s * 4
    data_vmem = 4 * blk_bytes                    # 2 buffers x (in + out)
    gamma_vmem = 2 * C_pad * _round_up(C, 128) * 4
    vmem_limit = int(min(max(data_vmem + temp_blocks * blk_bytes + gamma_vmem
                             + (4 << 20), 32 << 20), 48 << 20))

    cost = pl.CostEstimate(
        flops=2 * B * C * C * S + 6 * B * C * S,
        transcendentals=B * C * S,
        bytes_accessed=2 * B * C * S * x.dtype.itemsize + C * C * 4 + C * 4)

    out_flat = pl.pallas_call(
        kernel,
        out_shape=jax.ShapeDtypeStruct((B, C, S), x.dtype),
        grid_spec=pltpu.PrefetchScalarGridSpec(
            num_scalar_prefetch=0,
            grid=grid,
            in_specs=[x_spec, gamma_spec, beta_spec],
            out_specs=o_spec),
        compiler_params=pltpu.CompilerParams(
            dimension_semantics=("parallel", "parallel"),
            vmem_limit_bytes=vmem_limit),
        cost_estimate=cost,
    )(x_flat, gamma, beta_col)

    out = out_flat.reshape(B, C, H, W)
    if orig_shape is not None:
        out = out.reshape(orig_shape)
    return out


# ---------------------------------------------------------------------------
# Reference / test harness
# ---------------------------------------------------------------------------

def _init_gdn_params(ch, gamma_init=0.1, reparam_offset=2.0 ** (-18)):
    """Deterministic init exactly as GDN.build()."""
    pedestal = jnp.float32(reparam_offset ** 2)
    beta = jnp.sqrt(jnp.ones((ch,), jnp.float32) + pedestal)
    g = gamma_init * jnp.eye(ch, dtype=jnp.float32) + pedestal
    gamma = jnp.sqrt(g)
    return beta, gamma


def _gdn_reference(x, beta_param, gamma_param, *, inverse=False,
                   beta_min=1e-6, reparam_offset=2.0 ** (-18)):
    """Plain-JAX reference (forward only; LowerBound backward is autograd-only)."""
    # TODO(synk): LowerBound's custom backward (gradient gating) has no forward-pass
    # equivalent to port; only the forward max() semantics are implemented here.
    pedestal = jnp.float32(reparam_offset ** 2)
    beta_bound = jnp.float32((beta_min + reparam_offset ** 2) ** 0.5)
    gamma_bound = jnp.float32(reparam_offset)
    beta = jnp.maximum(beta_param, beta_bound) ** 2 - pedestal
    gamma = jnp.maximum(gamma_param, gamma_bound) ** 2 - pedestal
    x2 = x * x
    norm = jnp.einsum('ij,bjhw->bihw', gamma, x2,
                      precision=jax.lax.Precision.HIGHEST)
    norm = jnp.sqrt(norm + beta[None, :, None, None])
    return x * norm if inverse else x / norm


if __name__ == "__main__":
    key = jax.random.PRNGKey(0)
    B, C, H, W = 2, 4, 16, 16
    x = jax.random.normal(key, (B, C, H, W), dtype=jnp.float32)
    beta_p, gamma_p = _init_gdn_params(C)

    # GDN (small-C VPU path)
    out = jax.block_until_ready(gdn_forward(x, beta_p, gamma_p, inverse=False))
    ref = _gdn_reference(x, beta_p, gamma_p, inverse=False)
    assert out.shape == (B, C, H, W)
    assert jnp.allclose(out, ref, atol=1e-5, rtol=1e-5), "GDN mismatch vs reference"

    # IGDN (inverse path)
    out_inv = jax.block_until_ready(gdn_forward(x, beta_p, gamma_p, inverse=True))
    ref_inv = _gdn_reference(x, beta_p, gamma_p, inverse=True)
    assert jnp.allclose(out_inv, ref_inv, atol=1e-5, rtol=1e-5), "IGDN mismatch"

    # Ragged spatial tail (S=100 < 128-lane tile): exercises OOB-clipped writes.
    x_r = jax.random.normal(jax.random.PRNGKey(1), (2, 4, 10, 10), jnp.float32)
    out_r = jax.block_until_ready(gdn_forward(x_r, beta_p, gamma_p))
    ref_r = _gdn_reference(x_r, beta_p, gamma_p)
    assert jnp.allclose(out_r, ref_r, atol=1e-5, rtol=1e-5), "ragged-tail mismatch"

    # Larger channel count: exercises the MXU (C > 8) path.
    C2 = 16
    beta_p2, gamma_p2 = _init_gdn_params(C2)
    x_m = jax.random.normal(jax.random.PRNGKey(2), (2, C2, 8, 8), jnp.float32)
    out_m = jax.block_until_ready(gdn_forward(x_m, beta_p2, gamma_p2))
    ref_m = _gdn_reference(x_m, beta_p2, gamma_p2)
    assert jnp.allclose(out_m, ref_m, atol=1e-4, rtol=1e-4), "MXU-path mismatch"

    print("KERNEL_OK")
</pallas_src>

<mosaic_0001>
module attributes {stable_mosaic.version = 11 : i64} {
  func.func @_gdn_kernel_small(%arg0: i32, %arg1: i32, %arg2: memref<1x4x256xf32, #tpu.memory_space<vmem>>, %arg3: memref<4x4xf32, #tpu.memory_space<vmem>>, %arg4: memref<4x1xf32, #tpu.memory_space<vmem>>, %arg5: memref<1x4x256xf32, #tpu.memory_space<vmem>>) attributes {dimension_semantics = [#tpu.dimension_semantics<parallel>, #tpu.dimension_semantics<parallel>], iteration_bounds = array<i64: 2, 1>, scalar_prefetch = 0 : i64, scratch_operands = 0 : i64, tpu.core_type = #tpu.core_type<tc>, window_params = [{transform_indices = @transform_0, window_bounds = array<i64: 1, 4, 256>}, {pipeline_mode = #tpu.pipeline_mode<synchronous>, transform_indices = @transform_1, window_bounds = array<i64: 4, 4>}, {pipeline_mode = #tpu.pipeline_mode<synchronous>, transform_indices = @transform_2, window_bounds = array<i64: 4, 1>}, {transform_indices = @transform_3, window_bounds = array<i64: 1, 4, 256>}]} {
    %c0 = arith.constant 0 : index
    %c0_0 = arith.constant 0 : index
    %0 = vector.load %arg3[%c0, %c0_0] : memref<4x4xf32, #tpu.memory_space<vmem>>, vector<4x4xf32>
    %1 = vector.extract_strided_slice %0 {offsets = [0, 0], sizes = [4, 1], strides = [1, 1]} : vector<4x4xf32> to vector<4x1xf32>
    %2 = vector.extract_strided_slice %0 {offsets = [0, 1], sizes = [4, 1], strides = [1, 1]} : vector<4x4xf32> to vector<4x1xf32>
    %3 = vector.extract_strided_slice %0 {offsets = [0, 2], sizes = [4, 1], strides = [1, 1]} : vector<4x4xf32> to vector<4x1xf32>
    %4 = vector.extract_strided_slice %0 {offsets = [0, 3], sizes = [4, 1], strides = [1, 1]} : vector<4x4xf32> to vector<4x1xf32>
    %c0_1 = arith.constant 0 : index
    %c0_2 = arith.constant 0 : index
    %5 = vector.load %arg4[%c0_1, %c0_2] : memref<4x1xf32, #tpu.memory_space<vmem>>, vector<4x1xf32>
    %c0_3 = arith.constant 0 : index
    %c0_4 = arith.constant 0 : index
    %c0_5 = arith.constant 0 : index
    %6 = vector.load %arg2[%c0_3, %c0_4, %c0_5] : memref<1x4x256xf32, #tpu.memory_space<vmem>>, vector<1x4x256xf32>
    %7 = vector.shape_cast %6 : vector<1x4x256xf32> to vector<4x256xf32>
    %8 = arith.mulf %7, %7 : vector<4x256xf32>
    %9 = vector.extract_strided_slice %8 {offsets = [0, 0], sizes = [1, 256], strides = [1, 1]} : vector<4x256xf32> to vector<1x256xf32>
    %10 = vector.broadcast %1 : vector<4x1xf32> to vector<4x256xf32>
    %11 = vector.broadcast %9 : vector<1x256xf32> to vector<4x256xf32>
    %12 = arith.mulf %10, %11 : vector<4x256xf32>
    %13 = vector.extract_strided_slice %8 {offsets = [1, 0], sizes = [1, 256], strides = [1, 1]} : vector<4x256xf32> to vector<1x256xf32>
    %14 = vector.broadcast %2 : vector<4x1xf32> to vector<4x256xf32>
    %15 = vector.broadcast %13 : vector<1x256xf32> to vector<4x256xf32>
    %16 = arith.mulf %14, %15 : vector<4x256xf32>
    %17 = arith.addf %12, %16 : vector<4x256xf32>
    %18 = vector.extract_strided_slice %8 {offsets = [2, 0], sizes = [1, 256], strides = [1, 1]} : vector<4x256xf32> to vector<1x256xf32>
    %19 = vector.broadcast %3 : vector<4x1xf32> to vector<4x256xf32>
    %20 = vector.broadcast %18 : vector<1x256xf32> to vector<4x256xf32>
    %21 = arith.mulf %19, %20 : vector<4x256xf32>
    %22 = arith.addf %17, %21 : vector<4x256xf32>
    %23 = vector.extract_strided_slice %8 {offsets = [3, 0], sizes = [1, 256], strides = [1, 1]} : vector<4x256xf32> to vector<1x256xf32>
    %24 = vector.broadcast %4 : vector<4x1xf32> to vector<4x256xf32>
    %25 = vector.broadcast %23 : vector<1x256xf32> to vector<4x256xf32>
    %26 = arith.mulf %24, %25 : vector<4x256xf32>
    %27 = arith.addf %22, %26 : vector<4x256xf32>
    %28 = vector.broadcast %5 : vector<4x1xf32> to vector<4x256xf32>
    %29 = arith.addf %27, %28 : vector<4x256xf32>
    %30 = math.rsqrt %29 : vector<4x256xf32>
    %31 = arith.mulf %7, %30 : vector<4x256xf32>
    %c0_6 = arith.constant 0 : index
    %c0_7 = arith.constant 0 : index
    %c0_8 = arith.constant 0 : index
    %32 = vector.load %arg5[%c0_6, %c0_7, %c0_8] : memref<1x4x256xf32, #tpu.memory_space<vmem>>, vector<1x4x256xf32>
    %33 = vector.shape_cast %32 : vector<1x4x256xf32> to vector<4x256xf32>
    %34 = vector.shape_cast %31 : vector<4x256xf32> to vector<1x4x256xf32>
    tpu.vector_store %arg5[%c0_6, %c0_7, %c0_8], %34 {strides = array<i32>} : memref<1x4x256xf32, #tpu.memory_space<vmem>>, vector<1x4x256xf32>,
    return
  }
  func.func @transform_0(%arg0: i32, %arg1: i32) -> (i32, i32, i32) {
    %c0_i32 = arith.constant 0 : i32
    %c0_i32_0 = arith.constant 0 : i32
    return %arg0, %c0_i32, %arg1 : i32, i32, i32
  }
  func.func @transform_1(%arg0: i32, %arg1: i32) -> (i32, i32) {
    %c0_i32 = arith.constant 0 : i32
    %c0_i32_0 = arith.constant 0 : i32
    %c0_i32_1 = arith.constant 0 : i32
    return %c0_i32, %c0_i32_0 : i32, i32
  }
  func.func @transform_2(%arg0: i32, %arg1: i32) -> (i32, i32) {
    %c0_i32 = arith.constant 0 : i32
    %c0_i32_0 = arith.constant 0 : i32
    %c0_i32_1 = arith.constant 0 : i32
    return %c0_i32, %c0_i32_0 : i32, i32
  }
  func.func @transform_3(%arg0: i32, %arg1: i32) -> (i32, i32, i32) {
    %c0_i32 = arith.constant 0 : i32
    %c0_i32_0 = arith.constant 0 : i32
    return %arg0, %c0_i32, %arg1 : i32, i32, i32
  }
}

</mosaic_0001>

<bundles_post_ra>
// kernel: tpu_custom_call.1
= control target key start
LH: loop header
LB: loop body
LE: loop exit
PB: predicated region body
PF: predicated region fallthrough
CT: control target
= control target key end

     0   :  { %8 = vsyncpa [#allocation3], 0  ;;  %s846_s0 = inlined_call_operand.hbm [shape: f32[2,4,256], index: 0, kind: input, shape index: {}]   ;;  %s847_s1 = inlined_call_operand.vmem [shape: f32[4,4], index: 1, kind: input, shape index: {}]   ;;  %s848_s2 = inlined_call_operand.vmem [shape: f32[4,1], index: 2, kind: input, shape index: {}]   ;;  %s849_s3 = inlined_call_operand.hbm [shape: f32[2,4,256], index: 3, kind: output, shape index: {}]  }
   0x1   :  { %10 = vsyncpa [#allocation3 + $0x1], 0 }
   0x2   :  { %11 = vsyncpa [#allocation4], 0 }
   0x3   :  { %13 = vsyncpa [#allocation4 + $0x1], 0  ;;  %s664_s12 = smov 0   ;;  %s666_s13 = smov 0  }
   0x4   :  { %s668_s14 = smov 0   ;;  %s670_s15 = smov 0  }
   0x5   :  { %s672_s16 = smov 0   ;;  %s674_s17 = smov 0  }
   0x6 LB: > { %s431_s18 = sadd.s32 4294967295, %s636_s17   ;;  %s432_s19 = sadd.s32 4294967294, %s636_s17   ;;  %s636_s17 = sphi %s674_s17, %s19_s17   ;;  %s632_s16 = sphi %s672_s16, %s865_s16   ;;  %s628_s15 = sphi %s670_s15, %s864_s15   ;;  %s624_s14 = sphi %s668_s14, %s863_s14   ;;  %s620_s13 = sphi %s666_s13, %s862_s13   ;;  %s616_s12 = sphi %s664_s12, %s861_s12  }
   0x7   : > { %s31_s20 = sadd.s32 1, %s632_s16  ;;  %s40_s21 = sadd.s32 1, %s624_s14 }
   0x8   : > { %p33_p0 = scmp.ge.s32.totalorder %s31_s20, 2  ;;  %p47_p1 = scmp.ne.s32.totalorder %s624_s14, %s620_s13 }
   0x9   : > { %p48_p2 = scmp.eq.s32.totalorder %s636_s17, 0  ;;  %p53_p3 = scmp.ne.s32.totalorder %s620_s13, %s616_s12 }
   0xa   : > { %s867_s20 = smov (%p33_p0, %s31_s20), 0  ;;  %p54_p5 = scmp.eq.s32.totalorder %s431_s18, 0 }
   0xb   : > { %p705_p4 = por %p48_p2, %p47_p1  ;;  %s35_s23 = ssub.s32 %s632_s16, %s867_s20 }
   0xc   : > { %p121_p6 = scmp.eq.s32.totalorder %s431_s18, 1  ;;  %p38_p7 = scmp.eq.s32.totalorder %s35_s23, 0 }
   0xd   : > { %p711_p8 = por %p54_p5, %p53_p3  ;;  %p127_p10 = scmp.eq.s32.totalorder %s432_s19, 1 }
   0xe   : > { %p715_p9 = por %p121_p6, %p47_p1  ;;  %p460_p13 = scmp.lt.s32.totalorder %s636_s17, 2 }
   0xf   : > { %s720_s26 = scalar_select %p38_p7, %s624_s14, %s40_s21  }
  0x10   : > { %s853_s25 = scalar_select %p715_p9, 1, 0 }
  0x11   : > { %p722_p11 = por %p127_p10, %p53_p3  ;;  %s153_s28 = sand.u32 1, %s624_s14  }
  0x12   : > { %s435_s29 = sshll.u32 %s153_s28, 3  ;;  %s446_s30 = sshll.u32 %s632_s16, 7 }
  0x13   : > { %s854_s27 = scalar_select %p722_p11, 1, 0 }
  0x14   : > { %s733_s6 = scalar_lea.hbm %s846_s0, %s446_s30  ;;  %s157_s7 = scalar_lea.vmem [#allocation2], %s435_s29 }
  0x15   : > { %s167_s8 = sshll.u32 %s157_s7, 4  ;;  %p739_p0 = pnand %p460_p13, %p705_p4  ;;  %s735_s8 = int_to_ptr.vmem [resolvable:$true] %s167_s8 }
  0x16   : > { %s154_s10 = scalar_lea.sflag [#allocation3], %s153_s28  ;;  %s524_s11 = scalar_lea.hbm %s733_s6, 128 }
  0x17   : > { %p525_p3 = scmp.ne.s32.totalorder %s733_s6, %s524_s11  ;;  %p526_p5 = pneg %p739_p0 }
  0x18   : > { %s529_s21 = scalar_lea.hbm %s846_s0, 256  ;;  %p530_p4 = scmp.lt.u32.totalorder %s733_s6, %s846_s0 }
  0x19   : > { %p527_p6 = pnand %p526_p5, %p525_p3  ;;  %p531_p10 = scmp.lt.u32.totalorder %s529_s21, %s524_s11 }
  0x1a   : > { %p533_p12 = scmp.lt.u32.totalorder %s524_s11, %s733_s6 }
  0x1b   : > { %p528_p7 = pneg %p527_p6  ;;  %p532_p13 = por %p531_p10, %p530_p4 }
  0x1d   : > { %p534_p1 = por %p533_p12, %p532_p13 }
  0x1f   : > { %p535_p2 = pnand %p534_p1, %p528_p7 }
  0x21   : > { %538 = shalt.err (!%p535_p2)
}
  0x22   : > { %s539_s28 = scalar_lea.vmem %s735_s8, 128  ;;  %s638_s29 = smov [#allocation2]  }
  0x23   : > { %p540_p3 = scmp.ne.s32.totalorder %s735_s8, %s539_s28  ;;  %s544_s30 = sshll.u32 %s638_s29, 4  ;;  %s545_s30 = int_to_ptr.vmem [resolvable:$false] %s544_s30 }
  0x24   : > { %s546_s4 = scalar_lea.vmem %s545_s30, 256  ;;  %p547_p9 = scmp.lt.s32.totalorder %s735_s8, %s545_s30 }
  0x25   : > { %p542_p6 = pnand %p540_p3, %p526_p5  ;;  %p548_p4 = scmp.lt.s32.totalorder %s546_s4, %s539_s28 }
  0x27   : > { %p543_p11 = pneg %p542_p6  ;;  %p549_p10 = por %p548_p4, %p547_p9 }
  0x29   : > { %p550_p12 = pnand %p549_p10, %p543_p11 }
  0x2b   : > { %553 = shalt.err (!%p550_p12)
}
  0x2c   : > { %455 = dma.hbm_to_vmem [thread:$0]  (!%p739_p0), %s733_s6, 128, %s735_s8, %s154_s10  }
  0x2d   : > { %p856_p1 = scmp.lt.s32.totalorder %s636_s17, 3  ;;  %p857_p2 = scmp.ge.s32.totalorder %s636_s17, 1 }
  0x2f   : > { %p173_p5 = pnand %p857_p2, %p856_p1 }
  0x30   : > { %s775_s5 = sand.u32 (!%p173_p5), 1, %s620_s13  }
  0x31   : > { %176 = sbr.rel (%p173_p5) target bundleno = 232 (0xe8), region = 32  ;;  %s439_s7 = sshll.u32 (!%p173_p5), %s775_s5, 3 }
  0x32   : > { %s179_s11 = scalar_lea.sflag (!%p173_p5), [#allocation3], %s775_s5  ;;  %s182_s9 = scalar_lea.vmem (!%p173_p5), [#allocation2], %s439_s7 }
  0x38   : > { %607 = dma.done.wait (%p711_p8), %s179_s11, 128  }
  0x39   : > { %609 = vsyncadd (%p711_p8), %s179_s11, 4294967168  ;;  %v639_v0 = vmov 0   ;;  %v640_v1 = vmov 2   ;;  %v207_v2 = vld [vmem:[%s847_s1] sm:$0xf]  ;;  %v641_v3 = vmov 1   ;;  %v217_v6 = vlaneseq }
  0x3a   : > { %514 = vset.pattern.permute.xlu0 %v639_v0  ;;  %516 = vset.pattern.permute.xlu1 %v640_v1  ;;  %v642_v4 = vmov 3   ;;  %v208_v5 = vld [vmem:[%s848_s2] sm:$0xf]  ;;  %s447_s24 = sshll.u32 %s628_s15, 7  ;;  %s204_s19 = scalar_lea.vmem [#allocation5], %s439_s7 }
  0x3b   : > { %213 = vperm.xlu0 %514, %v207_v2   ;;  %264 = vperm.xlu1 %516, %v207_v2   ;;  %v218_v7 = vshrl.u32 %v217_v6, 7  ;;  %v209_v8 = vld [vmem:[%s182_s9] sm:$0xff]  ;;  %s347_s21 = sshll.u32 %s204_s19, 4  ;;  %s797_s28 = scalar_lea.hbm %s849_s3, %s447_s24  ;;  %s799_s21 = int_to_ptr.vmem [resolvable:$true] %s347_s21 }
  0x3c   : > { %v210_v10 = vmul.f32 %v209_v8, %v209_v8  ;;  %s331_s29 = scalar_lea.sflag [#allocation4], %s775_s5  ;;  %s554_s30 = scalar_lea.vmem %s799_s21, 128 }
  0x3d   : > { %v219_v9 = vsub.s32 0, %v218_v7  ;;  %v223_v11 = vsub.s32 4, %v218_v7  ;;  %v243_v12 = vsub.s32 1, %v218_v7  ;;  %v247_v13 = vsub.s32 5, %v218_v7  ;;  %p555_p8 = scmp.ne.s32.totalorder %s799_s21, %s554_s30  ;;  %p858_p9 = scmp.ne.s32.totalorder %s853_s25, 0 }
  0x3e   : > { %v269_v14 = vsub.s32 2, %v218_v7  ;;  %v273_v15 = vsub.s32 6, %v218_v7  ;;  %v295_v16 = vsub.s32 3, %v218_v7  ;;  %v299_v17 = vsub.s32 7, %v218_v7  ;;  %s643_s15 = smov [#allocation5]  }
  0x3f   : > { %515 = vset.pattern.permute.xlu0 %v641_v3  ;;  %517 = vset.pattern.permute.xlu1 %v642_v4  ;;  %v220_v18 = vrot.slane %v210_v10, %v219_v9  ;;  %v224_v19 = vrot.slane %v210_v10, %v223_v11  ;;  %v244_v20 = vrot.slane %v210_v10, %v243_v12  ;;  %p556_p11 = pnand %p555_p8, %p858_p9  ;;  %s558_s4 = sshll.u32 %s643_s15, 4  ;;  %s559_s4 = int_to_ptr.vmem [resolvable:$false] %s558_s4 }
  0x40   : > { %238 = vperm.xlu0 %515, %v207_v2   ;;  %290 = vperm.xlu1 %517, %v207_v2   ;;  %v248_v21 = vrot.slane %v210_v10, %v247_v13  ;;  %v270_v22 = vrot.slane %v210_v10, %v269_v14  ;;  %v274_v23 = vrot.slane %v210_v10, %v273_v15  ;;  %s560_s7 = scalar_lea.vmem %s559_s4, 256  ;;  %p561_p7 = scmp.lt.s32.totalorder %s799_s21, %s559_s4 }
  0x41   : > { %v296_v26 = vrot.slane %v210_v10, %v295_v16  ;;  %v300_v27 = vrot.slane %v210_v10, %v299_v17  ;;  %v230_v28 = vrot.slane %v220_v18, %v219_v9  ;;  %v234_v29 = vrot.slane %v224_v19, %v219_v9  ;;  %p557_p0 = pneg %p556_p11  ;;  %p562_p13 = scmp.lt.s32.totalorder %s560_s7, %s554_s30 }
  0x42   : > { %v254_v30 = vrot.slane %v244_v20, %v243_v12  ;;  %v258_v31 = vrot.slane %v248_v21, %v243_v12  ;;  %v280_v32 = vrot.slane %v270_v22, %v269_v14  ;;  %v284_v33 = vrot.slane %v274_v23, %v269_v14 }
  0x43   : > { %v306_v34 = vrot.slane %v296_v26, %v295_v16  ;;  %v310_v35 = vrot.slane %v300_v27, %v295_v16  ;;  %p563_p3 = por %p562_p13, %p561_p7 }
  0x44   : > { %518 = vset.pattern.permute.xlu1 %v639_v0  ;;  %519 = vset.pattern.permute.xlu0 %v639_v0 }
  0x45   : > { %317 = vperm.xlu1 %518, %v208_v5   ;;  %p564_p6 = pnand %p563_p3, %p557_p0 }
  0xba   : > { %v214_v24 = vpop.permute.xlu0 %213  ;;  %v265_v25 = vpop.permute.xlu1 %264 }
  0xbb   : > { %v235_v38 = vmul.f32 %v230_v28, %v214_v24  ;;  %v236_v39 = vmul.f32 %v234_v29, %v214_v24  ;;  %v285_v42 = vmul.f32 %v280_v32, %v265_v25  ;;  %v286_v43 = vmul.f32 %v284_v33, %v265_v25 }
  0xbf   : > { %v239_v36 = vpop.permute.xlu0 %238  ;;  %v291_v37 = vpop.permute.xlu1 %290 }
  0xc0   : > { %v259_v40 = vmul.f32 %v254_v30, %v239_v36  ;;  %v260_v41 = vmul.f32 %v258_v31, %v239_v36  ;;  %v311_v46 = vmul.f32 %v306_v34, %v291_v37  ;;  %v312_v47 = vmul.f32 %v310_v35, %v291_v37 }
  0xc2   : > { %v261_v44 = vadd.f32 %v259_v40, %v235_v38  ;;  %v262_v45 = vadd.f32 %v260_v41, %v236_v39 }
  0xc4   : > { %v287_v48 = vadd.f32 %v285_v42, %v261_v44  ;;  %v288_v49 = vadd.f32 %v286_v43, %v262_v45  ;;  %v318_v50 = vpop.permute.xlu1 %317 }
  0xc6   : > { %v313_v51 = vadd.f32 %v311_v46, %v287_v48  ;;  %v314_v52 = vadd.f32 %v312_v47, %v288_v49 }
  0xc8   : > { %v320_v53 = vadd.f32 %v318_v50, %v313_v51  ;;  %v321_v54 = vadd.f32 %v318_v50, %v314_v52 }
  0xca   : > { %520 = vrsqrt.f32 %v320_v53 }
  0xcb   : > { %522 = vrsqrt.f32 %v321_v54 }
  0xd4   : > { %v521_v55 = vpop.eup %520 }
  0xd5   : > { %v523_v56 = vpop.eup %522 }
  0xd6   : > { %v326_v57 = vcombine.low %v521_v55, %v523_v56 }
  0xd8   : > { %v328_v58 = vmul.f32 %v326_v57, %v209_v8 }
  0xda   : > { %329 = vst [vmem:[%s204_s19] sm:$0xff] %v328_v58 }
  0xdb   : > { %567 = shalt.err (!%p564_p6)
}
  0xdc   : > { %s568_s5 = scalar_lea.hbm %s797_s28, 128  ;;  %s572_s6 = scalar_lea.hbm %s849_s3, 256 }
  0xdd   : > { %p569_p4 = scmp.ne.s32.totalorder %s797_s28, %s568_s5  ;;  %p573_p1 = scmp.lt.u32.totalorder %s797_s28, %s849_s3 }
  0xde   : > { %p574_p2 = scmp.lt.u32.totalorder %s572_s6, %s568_s5  ;;  %p576_p8 = scmp.lt.u32.totalorder %s568_s5, %s797_s28 }
  0xdf   : > { %p570_p10 = pnand %p569_p4, %p858_p9 }
  0xe0   : > { %p575_p5 = por %p574_p2, %p573_p1 }
  0xe1   : > { %p571_p12 = pneg %p570_p10 }
  0xe2   : > { %p577_p11 = por %p576_p8, %p575_p5 }
  0xe4   : > { %p578_p0 = pnand %p577_p11, %p571_p12 }
  0xe6   : > { %581 = shalt.err (!%p578_p0)
}
  0xe7   : > { %450 = dma.vmem_to_hbm [thread:$0]  (%p858_p9), %s799_s21, 128, %s797_s28, %s331_s29  }
  0xe8 PF: > { %s359_s18 = sand.u32 1, %s616_s12   ;;  %p859_p7 = scmp.ne.s32.totalorder %s854_s27, 0 }
  0xe9   : > { %p860_p13 = scmp.ge.s32.totalorder %s636_s17, 2  ;;  %s360_s24 = scalar_lea.sflag [#allocation4], %s359_s18 }
  0xeb   : > { %p457_p3 = pnand %p860_p13, %p859_p7 }
  0xed   : > { %611 = dma.done.wait (!%p457_p3), %s360_s24, 128  }
  0xee   : > { %613 = vsyncadd (!%p457_p3), %s360_s24, 4294967168  ;;  %s19_s17 = sadd.s32 1, %s636_s17   ;;  %s861_s12 = smov %s620_s13 }
  0xef   : > { %p16_p6 = scmp.ge.s32.totalorder %s19_s17, 4   ;;  %s862_s13 = smov %s624_s14 }
  0xf0   : > { %s863_s14 = smov %s720_s26  ;;  %s864_s15 = smov %s632_s16 }
  0xf1   : > { %s865_s16 = smov %s867_s20  ;;  %18 = sbr.rel (!%p16_p6) target bundleno = 6 (0x6), region = 77 }
  0xf8   :  { %365 = vsyncpa [#allocation3], 1 }
  0xf9   :  { %367 = vsyncpa [#allocation3 + $0x1], 1 }
  0xfa   :  { %368 = vsyncpa [#allocation4], 1 }
  0xfb   :  { %370 = vsyncpa [#allocation4 + $0x1], 1 }

</bundles_post_ra>
